<compile_context>
chip_gen: v6e
topology: v6e:2x2x1
jax: 0.10.0
libtpu: 0.0.40
codegen_flags: <defaults>
</compile_context>

<pallas_src>
import numpy as np

import jax
import jax.numpy as jnp
from jax.experimental import pallas as pl
from jax.experimental.pallas import tpu as pltpu

SCALING = 2.0  # update_layer sets self.scaling[adapter] = 2


def _round_up(a, b):
    return (a + b - 1) // b * b


def _cdiv(a, b):
    return (a + b - 1) // b


def _largest_divisor(total, cap):
    """Largest d <= cap that divides total (total, cap >= 1)."""
    d = max(1, min(cap, total))
    while total % d:
        d -= 1
    return d


# --------------------------------------------------------------------------
# Kernel: tiled GEMM + bias with K-reduction axis and f32 VMEM accumulator
# --------------------------------------------------------------------------
def sharelora_gemm_kernel(x_ref, w_ref, b_ref, o_ref, acc_ref):
    k = pl.program_id(2)

    @pl.when(k == 0)
    def _():
        acc_ref[...] = jnp.zeros_like(acc_ref)

    acc_ref[...] += jnp.dot(x_ref[...], w_ref[...],
                            preferred_element_type=jnp.float32)

    @pl.when(k == pl.num_programs(2) - 1)
    def _():
        o_ref[...] = (acc_ref[...] + b_ref[...]).astype(o_ref.dtype)


# --------------------------------------------------------------------------
# One-time weight preparation (NOT per forward call)
# --------------------------------------------------------------------------
def prepare_weights(params):
    """Fold all adapter paths + padding into kernel-ready operands, once."""
    Wb = params["Wb"].astype(jnp.float32)                       # (out, in)
    out_f, in_f = Wb.shape

    # Base + local-LoRA fold, (in, out) layout.
    A_loc = params["A_local"].astype(jnp.float32)               # (r, in)
    B_loc = params["B_local"].astype(jnp.float32)               # (out, r)
    W_total = Wb.T + SCALING * (A_loc.T @ B_loc.T)              # (in, out) f32

    # Gated shared paths: x @ gin_d^T is (M,1) and everything downstream is a
    # constant linear map, so each path is the rank-1 update gin_d^T @ v.
    for key in ("intra", "inter"):
        gin_d = params[f"{key}_gin_d"].astype(jnp.float32)      # (1, in)
        gin_u = params[f"{key}_gin_u"].astype(jnp.float32)      # (in_shared, 1)
        A = params[f"A_{key}"].astype(jnp.float32)              # (r, in_shared)
        B = params[f"B_{key}"].astype(jnp.float32)              # (out_shared, r)
        gout_d = params[f"{key}_gout_d"].astype(jnp.float32)    # (1, out_shared)
        gout_u = params[f"{key}_gout_u"].astype(jnp.float32)    # (out, 1)
        v = gin_u.T @ A.T @ B.T @ gout_d.T @ gout_u.T           # (1, out)
        W_total = W_total + SCALING * (gin_d.T @ v)             # rank-1 fold

    # Pad once to lane/sublane-friendly multiples of 128 (zeros along K are
    # harmless for the reduction; padded N columns are sliced off post-kernel).
    K_pad = _round_up(in_f, 128)
    N_pad = _round_up(out_f, 128)
    W_pad = jnp.zeros((K_pad, N_pad), jnp.float32).at[:in_f, :out_f].set(W_total)
    bias = jnp.zeros((1, N_pad), jnp.float32).at[0, :out_f].set(
        params["bb"].astype(jnp.float32))

    return {
        "W": W_pad.astype(jnp.bfloat16),     # (K_pad, N_pad) bf16 MXU operand
        "bias": bias,                        # (1, N_pad) f32
        "in_features": in_f,
        "out_features": out_f,
    }


# --------------------------------------------------------------------------
# Forward wrapper (per call: only reshape / cast / pad x)
# --------------------------------------------------------------------------
def sharelora_linear_forward(x, prep, *, tm_max=256, tn_max=512, tk_max=512,
                             out_dtype=jnp.float32):
    """x: (..., in_features) -> (..., out_features)."""
    in_f = prep["in_features"]
    out_f = prep["out_features"]
    W = prep["W"]
    bias = prep["bias"]
    K_pad, N_pad = W.shape

    lead = x.shape[:-1]
    M = int(np.prod(lead)) if lead else 1
    x2d = x.reshape(M, in_f).astype(jnp.bfloat16)

    # Balanced row tiles: e.g. M=257 -> two ~136-row tiles, not one 512 pad.
    ni = _cdiv(M, tm_max)
    tm = _round_up(_cdiv(M, ni), 8)
    ni = _cdiv(M, tm)
    M_pad = ni * tm

    # Lane-dense N tile dividing N_pad; ensure >=2 N tiles when there is only
    # one row tile so both v7x TensorCores get work (if out_features allows).
    n_units = N_pad // 128
    tn_units = _largest_divisor(n_units, max(1, tn_max // 128))
    if ni == 1 and n_units >= 2 and n_units // tn_units < 2:
        tn_units = _largest_divisor(n_units, n_units // 2)
    tn = tn_units * 128
    nj = N_pad // tn

    # K tile dividing K_pad (bounds VMEM regardless of in_features).
    k_units = K_pad // 128
    tk_units = _largest_divisor(k_units, max(1, tk_max // 128))
    tk = tk_units * 128
    nk = K_pad // tk

    if M_pad != M or K_pad != in_f:
        x2d = jnp.pad(x2d, ((0, M_pad - M), (0, K_pad - in_f)))

    # Grid order by operand reuse: hold the bigger operand across the inner
    # spatial loop (k stays innermost for the accumulator pattern).
    w_stationary = N_pad >= M_pad
    if w_stationary:
        grid = (nj, ni, nk)
        x_map = lambda j, i, k: (i, k)
        w_map = lambda j, i, k: (k, j)
        b_map = lambda j, i, k: (0, j)
        o_map = lambda j, i, k: (i, j)
    else:
        grid = (ni, nj, nk)
        x_map = lambda i, j, k: (i, k)
        w_map = lambda i, j, k: (k, j)
        b_map = lambda i, j, k: (0, j)
        o_map = lambda i, j, k: (i, j)

    out = pl.pallas_call(
        sharelora_gemm_kernel,
        out_shape=jax.ShapeDtypeStruct((M_pad, N_pad), out_dtype),
        grid_spec=pltpu.PrefetchScalarGridSpec(
            num_scalar_prefetch=0,
            grid=grid,
            in_specs=[
                pl.BlockSpec((tm, tk), x_map),    # x tile
                pl.BlockSpec((tk, tn), w_map),    # folded weight tile
                pl.BlockSpec((1, tn), b_map),     # bias
            ],
            out_specs=pl.BlockSpec((tm, tn), o_map),
            scratch_shapes=[pltpu.VMEM((tm, tn), jnp.float32)],
        ),
        compiler_params=pltpu.CompilerParams(
            dimension_semantics=("parallel", "parallel", "arbitrary")),
    )(x2d, W, bias)

    out = out[:M, :out_f]
    return out.reshape(*lead, out_f)


# --------------------------------------------------------------------------
# Pure-JAX reference mirroring the PyTorch gate_forward math (f32 throughout)
# --------------------------------------------------------------------------
def ref_forward(x, params):
    lead = x.shape[:-1]
    in_f = x.shape[-1]
    x2d = x.reshape(-1, in_f).astype(jnp.float32)

    def lin(v, W, b=None):  # W in torch (out, in) layout
        y = v @ W.T
        return y + b if b is not None else y

    res = lin(x2d, params["Wb"], params["bb"])
    res = res + lin(lin(x2d, params["A_local"]), params["B_local"]) * SCALING
    for k in ("intra", "inter"):
        s = lin(x2d, params[f"{k}_gin_d"])
        s = lin(s, params[f"{k}_gin_u"])
        s = lin(s, params[f"A_{k}"])
        s = lin(s, params[f"B_{k}"])
        s = lin(s, params[f"{k}_gout_d"])
        s = lin(s, params[f"{k}_gout_u"])
        res = res + s * SCALING
    return res.reshape(*lead, -1)


def make_params(key, in_f, out_f, r_local, r_intra, r_inter, in_shared, out_shared):
    """Deterministic synthetic parameters (torch (out, in) weight layout).

    NOTE: real init zeroes lora_B (making the LoRA delta zero at step 0); we use
    nonzero values so the kernel output is nontrivial to verify.
    """
    names_shapes = {
        "Wb": (out_f, in_f), "bb": (out_f,),
        "A_local": (r_local, in_f), "B_local": (out_f, r_local),
        "A_intra": (r_intra, in_shared), "B_intra": (out_shared, r_intra),
        "A_inter": (r_inter, in_shared), "B_inter": (out_shared, r_inter),
        "intra_gin_d": (1, in_f), "intra_gin_u": (in_shared, 1),
        "intra_gout_d": (1, out_shared), "intra_gout_u": (out_f, 1),
        "inter_gin_d": (1, in_f), "inter_gin_u": (in_shared, 1),
        "inter_gout_d": (1, out_shared), "inter_gout_u": (out_f, 1),
    }
    params = {}
    for name, shape in names_shapes.items():
        key, sub = jax.random.split(key)
        params[name] = jax.random.normal(sub, shape, jnp.float32) * 0.1
    return params


if __name__ == "__main__":
    batch, seq = 2, 8
    in_f, out_f = 128, 128
    r_local, r_intra, r_inter = 4, 4, 8
    in_shared, out_shared = 64, 48   # shared (intra/inter) module dims

    key = jax.random.PRNGKey(0)
    key, kx = jax.random.split(key)
    x = jax.random.normal(kx, (batch, seq, in_f), jnp.float32)
    params = make_params(key, in_f, out_f, r_local, r_intra, r_inter,
                         in_shared, out_shared)

    prep = prepare_weights(params)   # one-time; not part of the per-step forward
    out = sharelora_linear_forward(x, prep)
    out = jax.block_until_ready(out)

    ref = ref_forward(x, params)
    # bf16 MXU operands (f32 accumulation) + the full adapter fold into a bf16
    # weight shift the result slightly vs. pure-f32 torch math; well within
    # LoRA noise.  Flag for deep stacks / precision-sensitive consumers.
    np.testing.assert_allclose(np.asarray(out), np.asarray(ref),
                               rtol=5e-2, atol=5e-2)

    print("KERNEL_OK")
</pallas_src>

<mosaic_0001>
module attributes {stable_mosaic.version = 11 : i64} {
  func.func @sharelora_gemm_kernel(%arg0: i32, %arg1: i32, %arg2: i32, %arg3: memref<16x128xbf16, #tpu.memory_space<vmem>>, %arg4: memref<128x128xbf16, #tpu.memory_space<vmem>>, %arg5: memref<1x128xf32, #tpu.memory_space<vmem>>, %arg6: memref<16x128xf32, #tpu.memory_space<vmem>>, %arg7: memref<16x128xf32, #tpu.memory_space<vmem>>) attributes {dimension_semantics = [#tpu.dimension_semantics<parallel>, #tpu.dimension_semantics<parallel>, #tpu.dimension_semantics<arbitrary>], iteration_bounds = array<i64: 1, 1, 1>, scalar_prefetch = 0 : i64, scratch_operands = 1 : i64, tpu.core_type = #tpu.core_type<tc>, window_params = [{transform_indices = @transform_0, window_bounds = array<i64: 16, 128>}, {transform_indices = @transform_1, window_bounds = array<i64: 128, 128>}, {transform_indices = @transform_2, window_bounds = array<i64: 1, 128>}, {transform_indices = @transform_3, window_bounds = array<i64: 16, 128>}]} {
    %c0_i32 = arith.constant 0 : i32
    %0 = arith.cmpi eq, %arg2, %c0_i32 : i32
    %1 = arith.extui %0 : i1 to i32
    %c0_i32_0 = arith.constant 0 : i32
    %2 = arith.cmpi ne, %1, %c0_i32_0 : i32
    scf.if %2 {
      %cst_10 = arith.constant 0.000000e+00 : f32
      %12 = vector.broadcast %cst_10 : f32 to vector<16x128xf32>
      %c0_11 = arith.constant 0 : index
      %c0_12 = arith.constant 0 : index
      %13 = vector.load %arg7[%c0_11, %c0_12] : memref<16x128xf32, #tpu.memory_space<vmem>>, vector<16x128xf32>
      tpu.vector_store %arg7[%c0_11, %c0_12], %12 {strides = array<i32>} : memref<16x128xf32, #tpu.memory_space<vmem>>, vector<16x128xf32>,
    } else {
    }
    %c0 = arith.constant 0 : index
    %c0_1 = arith.constant 0 : index
    %3 = vector.load %arg7[%c0, %c0_1] : memref<16x128xf32, #tpu.memory_space<vmem>>, vector<16x128xf32>
    %c0_2 = arith.constant 0 : index
    %c0_3 = arith.constant 0 : index
    %4 = vector.load %arg3[%c0_2, %c0_3] : memref<16x128xbf16, #tpu.memory_space<vmem>>, vector<16x128xbf16>
    %c0_4 = arith.constant 0 : index
    %c0_5 = arith.constant 0 : index
    %5 = vector.load %arg4[%c0_4, %c0_5] : memref<128x128xbf16, #tpu.memory_space<vmem>>, vector<128x128xbf16>
    %cst = arith.constant dense<0.000000e+00> : vector<16x128xf32>
    %6 = tpu.matmul %4, %5, %cst {dimension_numbers = #tpu.dot_dimension_numbers<[1], [0], [0], [1], [0, 0, 1, 1], [], []>} : vector<16x128xbf16>, vector<128x128xbf16>, vector<16x128xf32> -> vector<16x128xf32>
    %7 = arith.addf %3, %6 : vector<16x128xf32>
    %c0_6 = arith.constant 0 : index
    %c0_7 = arith.constant 0 : index
    %8 = vector.load %arg7[%c0_6, %c0_7] : memref<16x128xf32, #tpu.memory_space<vmem>>, vector<16x128xf32>
    tpu.vector_store %arg7[%c0_6, %c0_7], %7 {strides = array<i32>} : memref<16x128xf32, #tpu.memory_space<vmem>>, vector<16x128xf32>,
    %c0_i32_8 = arith.constant 0 : i32
    %9 = arith.cmpi eq, %arg2, %c0_i32_8 : i32
    %10 = arith.extui %9 : i1 to i32
    %c0_i32_9 = arith.constant 0 : i32
    %11 = arith.cmpi ne, %10, %c0_i32_9 : i32
    scf.if %11 {
      %c0_10 = arith.constant 0 : index
      %c0_11 = arith.constant 0 : index
      %12 = vector.load %arg7[%c0_10, %c0_11] : memref<16x128xf32, #tpu.memory_space<vmem>>, vector<16x128xf32>
      %c0_12 = arith.constant 0 : index
      %c0_13 = arith.constant 0 : index
      %13 = vector.load %arg5[%c0_12, %c0_13] : memref<1x128xf32, #tpu.memory_space<vmem>>, vector<1x128xf32>
      %14 = vector.broadcast %13 : vector<1x128xf32> to vector<16x128xf32>
      %15 = arith.addf %12, %14 : vector<16x128xf32>
      %c0_14 = arith.constant 0 : index
      %c0_15 = arith.constant 0 : index
      %16 = vector.load %arg6[%c0_14, %c0_15] : memref<16x128xf32, #tpu.memory_space<vmem>>, vector<16x128xf32>
      tpu.vector_store %arg6[%c0_14, %c0_15], %15 {strides = array<i32>} : memref<16x128xf32, #tpu.memory_space<vmem>>, vector<16x128xf32>,
    } else {
    }
    return
  }
  func.func @transform_0(%arg0: i32, %arg1: i32, %arg2: i32) -> (i32, i32) {
    %c0_i32 = arith.constant 0 : i32
    return %arg1, %arg2 : i32, i32
  }
  func.func @transform_1(%arg0: i32, %arg1: i32, %arg2: i32) -> (i32, i32) {
    %c0_i32 = arith.constant 0 : i32
    return %arg2, %arg0 : i32, i32
  }
  func.func @transform_2(%arg0: i32, %arg1: i32, %arg2: i32) -> (i32, i32) {
    %c0_i32 = arith.constant 0 : i32
    %c0_i32_0 = arith.constant 0 : i32
    return %c0_i32, %arg0 : i32, i32
  }
  func.func @transform_3(%arg0: i32, %arg1: i32, %arg2: i32) -> (i32, i32) {
    %c0_i32 = arith.constant 0 : i32
    return %arg1, %arg0 : i32, i32
  }
}

</mosaic_0001>

<bundles_post_ra>
// kernel: tpu_custom_call.1
= control target key start
LH: loop header
LB: loop body
LE: loop exit
PB: predicated region body
PF: predicated region fallthrough
CT: control target
= control target key end

     0   :  { %8 = vsyncpa [#allocation4], 0  ;;  %s367_s0 = inlined_call_operand.hbm [shape: bf16[16,128], index: 0, kind: input, shape index: {}]   ;;  %s368_s1 = inlined_call_operand.hbm [shape: bf16[128,128], index: 1, kind: input, shape index: {}]   ;;  %s369_s2 = inlined_call_operand.vmem [shape: f32[1,128], index: 2, kind: input, shape index: {}]   ;;  %s370_s3 = inlined_call_operand.hbm [shape: f32[16,128], index: 3, kind: output, shape index: {}]  }
   0x1   :  { %9 = vsyncpa [#allocation7], 0 }
   0x2   :  { %10 = vsyncpa [#allocation5], 0  ;;  %s326_s12 = smov [#allocation3]  }
   0x3   :  { %s16_s13 = sshll.u32 %s326_s12, 4  ;;  %s17_s13 = int_to_ptr.vmem [resolvable:$true] %s16_s13 }
   0x4   :  { %s268_s14 = scalar_lea.vmem %s17_s13, 128  ;;  %p273_p1 = scmp.lt.s32.totalorder %s17_s13, %s17_s13 }
   0x5   :  { %p269_p0 = scmp.ne.s32.totalorder %s17_s13, %s268_s14  ;;  %p274_p2 = scmp.lt.s32.totalorder %s268_s14, %s268_s14 }
   0x7   :  { %p275_p3 = por %p274_p2, %p273_p1 }
   0x9   :  { %p276_p4 = pnand %p275_p3, %p269_p0 }
   0xb   :  { %279 = shalt.err (!%p276_p4)
}
   0xc   :  { %s327_s15 = smov 64   ;;  %s328_s16 = smov 4  }
   0xd   :  { %22 = dma.hbm_to_vmem [thread:$0]  %s367_s0, 128, %s17_s13, [#allocation4], %s327_s15, %s327_s15, %s328_s16  }
   0xe   :  { %s329_s19 = smov [#allocation6]  }
   0xf   :  { %s28_s20 = sshll.u32 %s329_s19, 4  ;;  %s29_s20 = int_to_ptr.vmem [resolvable:$true] %s28_s20 }
  0x10   :  { %s288_s21 = scalar_lea.vmem %s29_s20, 1024  ;;  %p293_p6 = scmp.lt.s32.totalorder %s29_s20, %s29_s20 }
  0x11   :  { %p289_p5 = scmp.ne.s32.totalorder %s29_s20, %s288_s21  ;;  %p294_p7 = scmp.lt.s32.totalorder %s288_s21, %s288_s21 }
  0x13   :  { %p295_p8 = por %p294_p7, %p293_p6 }
  0x15   :  { %p296_p9 = pnand %p295_p8, %p289_p5 }
  0x17   :  { %299 = shalt.err (!%p296_p9)
}
  0x18   :  { %34 = dma.hbm_to_vmem [thread:$0]  %s368_s1, 1024, %s29_s20, [#allocation7], %s327_s15, %s327_s15, %s328_s16  }
  0x19   :  { %320 = dma.done.wait [#allocation4], 128  }
  0x1a   :  { %321 = vsyncadd [#allocation4], 4294967168 }
  0x1b   :  { %322 = dma.done.wait [#allocation7], 1024  }
  0x1c   :  { %323 = vsyncadd [#allocation7], 4294966272  ;;  %v330_v0 = vmov 0.0   ;;  %vm331_vm0 = vmmov 0   ;;  %v251_v1 = vld [vmem:[#allocation6 + $0x38] sm:$0xff]   ;;  %v252_v2 = vld [vmem:[#allocation6 + $0x30] sm:$0xff]  }
  0x1d   :  { %222 = vmatprep.subr.bf16.mxu0 %v330_v0  ;;  %238 = vmatprep.mubr.msk.bf16.mxu0 %vm331_vm0, %v330_v0  ;;  %v253_v3 = vld [vmem:[#allocation6 + $0x28] sm:$0xff]   ;;  %v254_v4 = vld [vmem:[#allocation6 + $0x20] sm:$0xff]   ;;  %v255_v5 = vld [vmem:[#allocation6 + $0x18] sm:$0xff]   ;;  %s332_s24 = smov [#allocation8]  }
  0x1e   :  { %223 = vmatpush3.bf16.msra.mxu0 %v251_v1  ;;  %v256_v6 = vld [vmem:[#allocation6 + $0x10] sm:$0xff]   ;;  %v257_v7 = vld [vmem:[#allocation6 + $0x8] sm:$0xff]   ;;  %v258_v8 = vld [vmem:[#allocation6] sm:$0xff]   ;;  %s190_s25 = sshll.u32 %s332_s24, 4  ;;  %s191_s25 = int_to_ptr.vmem [resolvable:$true] %s190_s25 }
  0x1f   :  { %224 = vmatprep.subr.bf16.mxu0 %v330_v0  ;;  %v259_v9 = vld [vmem:[#allocation3] sm:$0xff]   ;;  %s300_s26 = scalar_lea.vmem %s191_s25, 256  ;;  %p305_p11 = scmp.lt.s32.totalorder %s191_s25, %s191_s25 }
  0x20   :  { %v212_v10 = vld [vmem:[%s369_s2] ss:$0 sm:$0xff]  ;;  %p301_p10 = scmp.ne.s32.totalorder %s191_s25, %s300_s26  ;;  %p306_p12 = scmp.lt.s32.totalorder %s300_s26, %s300_s26 }
  0x22   :  { %225 = vmatpush3.bf16.msra.mxu0 %v252_v2  ;;  %p307_p13 = por %p306_p12, %p305_p11 }
  0x23   :  { %226 = vmatprep.subr.bf16.mxu0 %v330_v0 }
  0x24   :  { %p308_p0 = pnand %p307_p13, %p301_p10 }
  0x26   :  { %227 = vmatpush3.bf16.msra.mxu0 %v253_v3 }
  0x27   :  { %228 = vmatprep.subr.bf16.mxu0 %v330_v0 }
  0x2a   :  { %229 = vmatpush3.bf16.msra.mxu0 %v254_v4 }
  0x2b   :  { %230 = vmatprep.subr.bf16.mxu0 %v330_v0 }
  0x2e   :  { %231 = vmatpush3.bf16.msra.mxu0 %v255_v5 }
  0x2f   :  { %232 = vmatprep.subr.bf16.mxu0 %v330_v0 }
  0x32   :  { %233 = vmatpush3.bf16.msra.mxu0 %v256_v6 }
  0x33   :  { %234 = vmatprep.subr.bf16.mxu0 %v330_v0 }
  0x36   :  { %235 = vmatpush3.bf16.msra.mxu0 %v257_v7 }
  0x37   :  { %236 = vmatprep.subr.bf16.mxu0 %v330_v0 }
  0x3a   :  { %237 = vmatpush3.bf16.msra.mxu0 %v258_v8 }
  0x3d   :  { %239 = vmatmul.mubr.bf16.vlgmr.msra.gmra.mxu0 %v259_v9 }
  0xfd   :  { %v158_v11 = vpop.f32.mrf.mxu0 }
  0xfe   :  { %v181_v12 = vadd.f32 %v212_v10, %v158_v11 }
  0xff   :  { %v240_v13 = vpop.f32.mrf.mxu0 }
 0x100   :  { %183 = vst [vmem:[#allocation8] sm:$0xff] %v181_v12 }
 0x101   :  { %v161_v14 = vpop.f32.mrf.mxu0 }
 0x102   :  { %v182_v15 = vadd.f32 %v212_v10, %v161_v14 }
 0x103   :  { %v241_v16 = vpop.f32.mrf.mxu0 }
 0x104   :  { %184 = vst [vmem:[#allocation8 + $0x8] sm:$0xff] %v182_v15 }
 0x105   :  { %311 = shalt.err (!%p308_p0)
}
 0x106   :  { %s333_s27 = smov 128   ;;  %s334_s2 = smov 8  }
 0x107   :  { %196 = dma.vmem_to_hbm [thread:$0]  %s191_s25, 256, %s370_s3, [#allocation5], %s333_s27, %s333_s27, %s334_s2  }
 0x108   :  { %324 = dma.done.wait [#allocation5], 256  }
 0x109   :  { %325 = vsyncadd [#allocation5], 4294967040 }
 0x10a   :  { %200 = vsyncpa [#allocation4], 1 }
 0x10b   :  { %201 = vsyncpa [#allocation7], 1 }
 0x10c   :  { %202 = vsyncpa [#allocation5], 1 }

</bundles_post_ra>
